<compile_context>
chip_gen: v7x
topology: tpu7x:2x2x1
jax: 0.10.0
libtpu: 0.0.40
codegen_flags: <defaults>
</compile_context>

<pallas_src>
import jax
import jax.numpy as jnp
from jax.experimental import pallas as pl
from jax.experimental.pallas import tpu as pltpu


def _round_up(x, m):
    return ((x + m - 1) // m) * m


def _cdiv(a, b):
    return (a + b - 1) // b


def _vmem_capacity_bytes():
    """Physical VMEM per core; conservative 64 MiB fallback (v7x floor)."""
    try:
        info = pltpu.get_tpu_info()
        cap = int(getattr(info, "vmem_capacity_bytes", 0))
        if cap > 0:
            return cap
    except Exception:
        pass
    return 64 * 1024 * 1024


def _make_gcn_kernel(*, apply_proj, resident_h, tk):
    """Tiled  out = (A_hat @ H) [@ P] + b  with f32 accumulation over K."""

    def kernel(*refs):
        if apply_proj:
            a_ref, h_ref, p_ref, b_ref, o_ref, acc_ref = refs
        else:
            a_ref, h_ref, b_ref, o_ref, acc_ref = refs

        k = pl.program_id(1)

        @pl.when(k == 0)
        def _init():
            acc_ref[...] = jnp.zeros_like(acc_ref)

        if resident_h:
            # H lives fully in VMEM (DMA'd once); slice the current K chunk.
            start = pl.multiple_of(k * tk, tk)
            h_blk = h_ref[pl.ds(start, tk), :]
        else:
            h_blk = h_ref[...]

        # MXU: bf16 inputs, f32 accumulate.
        acc_ref[...] += jnp.dot(
            a_ref[...], h_blk, preferred_element_type=jnp.float32
        )

        @pl.when(k == pl.num_programs(1) - 1)
        def _finalize():
            if apply_proj:
                res = jnp.dot(
                    acc_ref[...].astype(jnp.bfloat16),
                    p_ref[...],
                    preferred_element_type=jnp.float32,
                ) + b_ref[...]
            else:
                res = acc_ref[...] + b_ref[...]
            o_ref[...] = res.astype(o_ref.dtype)

    return kernel


def gcn_conv(x, edge_index, weight, bias, *, tm_cap=512, tk_cap=2048,
             allow_resident_h=True):
    """GCNConv forward.

    x:          [N, dim_in]        float32 node features
    edge_index: [2, E]             int32, row=source, col=target
    weight:     [dim_out, dim_in]  (PyTorch Linear convention)
    bias:       [dim_out]
    returns:    [N, dim_out]
    """
    n, dim_in = x.shape
    dim_out = weight.shape[0]

    # --- graph glue: self loops + symmetric normalization --------------------
    loops = jnp.arange(n, dtype=edge_index.dtype)
    ei = jnp.concatenate(
        [edge_index, jnp.stack([loops, loops], axis=0)], axis=1
    )
    row, col = ei[0], ei[1]
    deg = jnp.zeros((n,), jnp.float32).at[col].add(1.0)
    deg_inv_sqrt = jnp.where(deg > 0.0, jax.lax.rsqrt(deg), 0.0)
    norm = deg_inv_sqrt[row] * deg_inv_sqrt[col]

    # --- contraction order: aggregate the narrower feature matrix ------------
    apply_proj = dim_in <= dim_out
    if apply_proj:
        h = x                               # [n, dim_in]; project in epilogue
        d_h = _round_up(dim_in, 128)
    else:
        h = x @ weight.T                    # hoisted XW; epilogue is acc+bias
        d_h = _round_up(dim_out, 128)
    d_o = _round_up(dim_out, 128)
    d_acc = d_h if apply_proj else d_o

    # Bound epilogue vreg pressure for wide outputs: keep tm modest, grow tk.
    if apply_proj and d_o >= 512:
        tm_cap = min(tm_cap, 256)

    # --- generation-aware VMEM budget -----------------------------------------
    cap = _vmem_capacity_bytes()
    budget = cap // 2                                   # footprint budget
    vmem_limit = max(32 * 1024 * 1024,
                     min(int(cap * 0.75), 112 * 1024 * 1024))

    # --- tile selection -------------------------------------------------------
    n16 = _round_up(max(n, 1), 16)          # bf16 sublane packing unit
    n128 = _round_up(max(n, 1), 128)        # lane unit (A_hat contraction axis)

    m_blocks = _cdiv(n16, min(tm_cap, n16))
    if m_blocks == 1 and n16 >= 32:
        m_blocks = 2                        # feed both v7x TensorCores
    k_blocks = _cdiv(n128, min(tk_cap, n128))

    def _layout(mb, kb):
        tm_ = _round_up(_cdiv(n16, mb), 16)
        tk_ = _round_up(_cdiv(n128, kb), 128)
        return tm_, tk_, _round_up(n16, tm_), _round_up(n128, tk_)

    def _cost(tm_, tk_, n_cols_, res_):
        a = 2 * tm_ * tk_ * 2                                   # A_hat (x2 buf)
        hb = 2 * n_cols_ * d_h * 2 if res_ else 2 * tk_ * d_h * 2
        ob = 2 * tm_ * d_o * 4                                  # out (x2 buf)
        ac = tm_ * d_acc * 4                                    # accumulator
        pb = (2 * d_h * d_o * 2) if apply_proj else 0           # projection
        bb = 2 * 8 * d_o * 4                                    # bias
        return a + hb + ob + ac + pb + bb

    tm, tk, n_rows, n_cols = _layout(m_blocks, k_blocks)
    resident_h = (
        allow_resident_h
        and 2 * n_cols * d_h * 2 <= budget // 2
        and _cost(tm, tk, n_cols, True) <= budget
    )
    while _cost(tm, tk, n_cols, resident_h) > budget:
        if resident_h:
            resident_h = False              # fall back to streamed H
        elif tk > 128:
            k_blocks += 1
            tm, tk, n_rows, n_cols = _layout(m_blocks, k_blocks)
        elif tm > 16:
            m_blocks += 1
            tm, tk, n_rows, n_cols = _layout(m_blocks, k_blocks)
        else:
            break

    grid = (n_rows // tm, n_cols // tk)

    # --- padded operands (lane-dense layouts) ---------------------------------
    # A_hat[target, source] = norm, scattered directly into bf16 (one HBM pass).
    a_hat = (
        jnp.zeros((n_rows, n_cols), jnp.bfloat16)
        .at[col, row]
        .add(norm.astype(jnp.bfloat16))
    )
    h_pad = (
        jnp.zeros((n_cols, d_h), jnp.bfloat16)
        .at[:n, : h.shape[1]]
        .set(h.astype(jnp.bfloat16))
    )
    b_pad = jnp.zeros((1, d_o), jnp.float32).at[0, :dim_out].set(
        bias.astype(jnp.float32)
    )

    h_spec = (
        pl.BlockSpec((n_cols, d_h), lambda i, k: (0, 0))      # resident, 1 DMA
        if resident_h
        else pl.BlockSpec((tk, d_h), lambda i, k: (k, 0))     # streamed per K
    )

    in_specs = [pl.BlockSpec((tm, tk), lambda i, k: (i, k)), h_spec]
    operands = [a_hat, h_pad]
    if apply_proj:
        p_pad = (
            jnp.zeros((d_h, d_o), jnp.bfloat16)
            .at[:dim_in, :dim_out]
            .set(weight.T.astype(jnp.bfloat16))
        )
        in_specs.append(pl.BlockSpec((d_h, d_o), lambda i, k: (0, 0)))
        operands.append(p_pad)
    in_specs.append(pl.BlockSpec((1, d_o), lambda i, k: (0, 0)))
    operands.append(b_pad)

    kernel = _make_gcn_kernel(
        apply_proj=apply_proj, resident_h=resident_h, tk=tk
    )

    out_padded = pl.pallas_call(
        kernel,
        out_shape=jax.ShapeDtypeStruct((n_rows, d_o), x.dtype),
        grid_spec=pltpu.PrefetchScalarGridSpec(
            num_scalar_prefetch=0,
            grid=grid,
            in_specs=in_specs,
            out_specs=pl.BlockSpec((tm, d_o), lambda i, k: (i, 0)),
            scratch_shapes=[pltpu.VMEM((tm, d_acc), jnp.float32)],
        ),
        compiler_params=pltpu.CompilerParams(
            dimension_semantics=("parallel", "arbitrary"),
            vmem_limit_bytes=vmem_limit,
        ),
    )(*operands)

    return out_padded[:n, :dim_out]


def reference_gcn(x, edge_index, weight, bias):
    """Pure-JAX f32 reference for correctness checking."""
    n = x.shape[0]
    loops = jnp.arange(n, dtype=edge_index.dtype)
    ei = jnp.concatenate(
        [edge_index, jnp.stack([loops, loops], axis=0)], axis=1
    )
    row, col = ei[0], ei[1]
    deg = jnp.zeros((n,), jnp.float32).at[col].add(1.0)
    dis = jnp.where(deg > 0.0, jax.lax.rsqrt(deg), 0.0)
    norm = dis[row] * dis[col]
    xw = x @ weight.T
    msgs = norm[:, None] * xw[row]
    out = jnp.zeros((n, weight.shape[0]), jnp.float32).at[col].add(msgs)
    return out + bias[None, :]


if __name__ == "__main__":
    key = jax.random.PRNGKey(0)

    def run_case(n_nodes, n_edges, dim_in, dim_out, case_key, **kw):
        k_x, k_e, k_w, k_b = jax.random.split(case_key, 4)
        x = jax.random.normal(k_x, (n_nodes, dim_in), dtype=jnp.float32)
        edge_index = jax.random.randint(
            k_e, (2, n_edges), 0, n_nodes, dtype=jnp.int32
        )
        scale = 1.0 / jnp.sqrt(jnp.float32(dim_in))
        weight = (
            jax.random.normal(k_w, (dim_out, dim_in), dtype=jnp.float32) * scale
        )
        bias = jax.random.normal(k_b, (dim_out,), dtype=jnp.float32) * 0.1

        out = jax.block_until_ready(
            gcn_conv(x, edge_index, weight, bias, **kw)
        )
        ref = reference_gcn(x, edge_index, weight, bias)
        assert out.shape == (n_nodes, dim_out)
        # bf16 A_hat / features / projection inside the kernel -> loosened tol.
        assert jnp.allclose(out, ref, atol=5e-2, rtol=5e-2), "mismatch vs ref"

    k0, k1, k2 = jax.random.split(key, 3)
    # dim_in <= dim_out: bf16 projection epilogue, resident H, single tile.
    run_case(16, 40, 8, 16, k0)
    # dim_in > dim_out: no-projection variant, 2 row tiles, multi-K reduction
    # over a VMEM-resident H sliced with pl.ds.
    run_case(300, 900, 32, 8, k1, tk_cap=128)
    # Streamed-H fallback path (resident H disabled).
    run_case(64, 200, 8, 16, k2, allow_resident_h=False)

    print("KERNEL_OK")
</pallas_src>

<mosaic_0001>
module attributes {stable_mosaic.version = 11 : i64} {
  func.func @kernel(%arg0: i32, %arg1: i32, %arg2: memref<16x128xbf16, #tpu.memory_space<vmem>>, %arg3: memref<128x128xbf16, #tpu.memory_space<vmem>>, %arg4: memref<128x128xbf16, #tpu.memory_space<vmem>>, %arg5: memref<1x128xf32, #tpu.memory_space<vmem>>, %arg6: memref<16x128xf32, #tpu.memory_space<vmem>>, %arg7: memref<16x128xf32, #tpu.memory_space<vmem>>) attributes {dimension_semantics = [#tpu.dimension_semantics<parallel>, #tpu.dimension_semantics<arbitrary>], iteration_bounds = array<i64: 1, 1>, scalar_prefetch = 0 : i64, scratch_operands = 1 : i64, tpu.core_type = #tpu.core_type<tc>, window_params = [{transform_indices = @transform_0, window_bounds = array<i64: 16, 128>}, {pipeline_mode = #tpu.pipeline_mode<synchronous>, transform_indices = @transform_1, window_bounds = array<i64: 128, 128>}, {pipeline_mode = #tpu.pipeline_mode<synchronous>, transform_indices = @transform_2, window_bounds = array<i64: 128, 128>}, {pipeline_mode = #tpu.pipeline_mode<synchronous>, transform_indices = @transform_3, window_bounds = array<i64: 1, 128>}, {transform_indices = @transform_4, window_bounds = array<i64: 16, 128>}]} {
    %c0_i32 = arith.constant 0 : i32
    %0 = arith.cmpi eq, %arg1, %c0_i32 : i32
    %1 = arith.extui %0 : i1 to i32
    %c0_i32_0 = arith.constant 0 : i32
    %2 = arith.cmpi ne, %1, %c0_i32_0 : i32
    scf.if %2 {
      %cst_9 = arith.constant 0.000000e+00 : f32
      %15 = vector.broadcast %cst_9 : f32 to vector<16x128xf32>
      %c0_10 = arith.constant 0 : index
      %c0_11 = arith.constant 0 : index
      %16 = vector.load %arg7[%c0_10, %c0_11] : memref<16x128xf32, #tpu.memory_space<vmem>>, vector<16x128xf32>
      tpu.vector_store %arg7[%c0_10, %c0_11], %15 {strides = array<i32>} : memref<16x128xf32, #tpu.memory_space<vmem>>, vector<16x128xf32>,
    } else {
    }
    %c128_i32 = arith.constant 128 : i32
    %3 = arith.muli %arg1, %c128_i32 : i32
    %4 = tpu.assume_multiple %3, 128 : i32
    %5 = arith.index_cast %4 : i32 to index
    %c0 = arith.constant 0 : index
    %6 = vector.load %arg3[%5, %c0] : memref<128x128xbf16, #tpu.memory_space<vmem>>, vector<128x128xbf16>
    %c0_1 = arith.constant 0 : index
    %c0_2 = arith.constant 0 : index
    %7 = vector.load %arg7[%c0_1, %c0_2] : memref<16x128xf32, #tpu.memory_space<vmem>>, vector<16x128xf32>
    %c0_3 = arith.constant 0 : index
    %c0_4 = arith.constant 0 : index
    %8 = vector.load %arg2[%c0_3, %c0_4] : memref<16x128xbf16, #tpu.memory_space<vmem>>, vector<16x128xbf16>
    %cst = arith.constant dense<0.000000e+00> : vector<16x128xf32>
    %9 = tpu.matmul %8, %6, %cst {dimension_numbers = #tpu.dot_dimension_numbers<[1], [0], [0], [1], [0, 0, 1, 1], [], []>} : vector<16x128xbf16>, vector<128x128xbf16>, vector<16x128xf32> -> vector<16x128xf32>
    %10 = arith.addf %7, %9 : vector<16x128xf32>
    %c0_5 = arith.constant 0 : index
    %c0_6 = arith.constant 0 : index
    %11 = vector.load %arg7[%c0_5, %c0_6] : memref<16x128xf32, #tpu.memory_space<vmem>>, vector<16x128xf32>
    tpu.vector_store %arg7[%c0_5, %c0_6], %10 {strides = array<i32>} : memref<16x128xf32, #tpu.memory_space<vmem>>, vector<16x128xf32>,
    %c0_i32_7 = arith.constant 0 : i32
    %12 = arith.cmpi eq, %arg1, %c0_i32_7 : i32
    %13 = arith.extui %12 : i1 to i32
    %c0_i32_8 = arith.constant 0 : i32
    %14 = arith.cmpi ne, %13, %c0_i32_8 : i32
    scf.if %14 {
      %c0_9 = arith.constant 0 : index
      %c0_10 = arith.constant 0 : index
      %15 = vector.load %arg7[%c0_9, %c0_10] : memref<16x128xf32, #tpu.memory_space<vmem>>, vector<16x128xf32>
      %16 = arith.truncf %15 : vector<16x128xf32> to vector<16x128xbf16>
      %c0_11 = arith.constant 0 : index
      %c0_12 = arith.constant 0 : index
      %17 = vector.load %arg4[%c0_11, %c0_12] : memref<128x128xbf16, #tpu.memory_space<vmem>>, vector<128x128xbf16>
      %cst_13 = arith.constant dense<0.000000e+00> : vector<16x128xf32>
      %18 = tpu.matmul %16, %17, %cst_13 {dimension_numbers = #tpu.dot_dimension_numbers<[1], [0], [0], [1], [0, 0, 1, 1], [], []>} : vector<16x128xbf16>, vector<128x128xbf16>, vector<16x128xf32> -> vector<16x128xf32>
      %c0_14 = arith.constant 0 : index
      %c0_15 = arith.constant 0 : index
      %19 = vector.load %arg5[%c0_14, %c0_15] : memref<1x128xf32, #tpu.memory_space<vmem>>, vector<1x128xf32>
      %20 = vector.broadcast %19 : vector<1x128xf32> to vector<16x128xf32>
      %21 = arith.addf %18, %20 : vector<16x128xf32>
      %c0_16 = arith.constant 0 : index
      %c0_17 = arith.constant 0 : index
      %22 = vector.load %arg6[%c0_16, %c0_17] : memref<16x128xf32, #tpu.memory_space<vmem>>, vector<16x128xf32>
      tpu.vector_store %arg6[%c0_16, %c0_17], %21 {strides = array<i32>} : memref<16x128xf32, #tpu.memory_space<vmem>>, vector<16x128xf32>,
    } else {
    }
    return
  }
  func.func @transform_0(%arg0: i32, %arg1: i32) -> (i32, i32) {
    %c0_i32 = arith.constant 0 : i32
    return %arg0, %arg1 : i32, i32
  }
  func.func @transform_1(%arg0: i32, %arg1: i32) -> (i32, i32) {
    %c0_i32 = arith.constant 0 : i32
    %c0_i32_0 = arith.constant 0 : i32
    %c0_i32_1 = arith.constant 0 : i32
    return %c0_i32, %c0_i32_0 : i32, i32
  }
  func.func @transform_2(%arg0: i32, %arg1: i32) -> (i32, i32) {
    %c0_i32 = arith.constant 0 : i32
    %c0_i32_0 = arith.constant 0 : i32
    %c0_i32_1 = arith.constant 0 : i32
    return %c0_i32, %c0_i32_0 : i32, i32
  }
  func.func @transform_3(%arg0: i32, %arg1: i32) -> (i32, i32) {
    %c0_i32 = arith.constant 0 : i32
    %c0_i32_0 = arith.constant 0 : i32
    %c0_i32_1 = arith.constant 0 : i32
    return %c0_i32, %c0_i32_0 : i32, i32
  }
  func.func @transform_4(%arg0: i32, %arg1: i32) -> (i32, i32) {
    %c0_i32 = arith.constant 0 : i32
    %c0_i32_0 = arith.constant 0 : i32
    return %arg0, %c0_i32 : i32, i32
  }
}

</mosaic_0001>

<bundles_post_ra>
// kernel: tpu_custom_call.1
= control target key start
LH: loop header
LB: loop body
LE: loop exit
PB: predicated region body
PF: predicated region fallthrough
CT: control target
= control target key end

     0   :  { %9 = vsyncpa [#allocation4], 0  ;;  %s629_s0 = inlined_call_operand.hbm [shape: bf16[16,128], index: 0, kind: input, shape index: {}]   ;;  %s630_s1 = inlined_call_operand.hbm [shape: bf16[128,128], index: 1, kind: input, shape index: {}]   ;;  %s631_s2 = inlined_call_operand.hbm [shape: bf16[128,128], index: 2, kind: input, shape index: {}]   ;;  %s632_s3 = inlined_call_operand.vmem [shape: f32[1,128], index: 3, kind: input, shape index: {}]   ;;  %s633_s4 = inlined_call_operand.hbm [shape: f32[16,128], index: 4, kind: output, shape index: {}]  }
   0x1   :  { %10 = vsyncpa [#allocation7], 0 }
   0x2   :  { %11 = vsyncpa [#allocation5], 0  ;;  %s527_s15 = smov [#allocation6]   ;;  %s528_s17 = smov [#allocation3]  }
   0x3   :  { %s29_s16 = sshll.u32 %s527_s15, 4  ;;  %s17_s18 = sshll.u32 %s528_s17, 4  ;;  %s30_s16 = int_to_ptr.vmem [resolvable:$true] %s29_s16  ;;  %s562_s18 = int_to_ptr.vmem [resolvable:$true] %s17_s18 }
   0x4   :  { %s433_s21 = scalar_lea.hbm %s630_s1, 1024 }
   0x5   :  { %p434_p0 = scmp.ne.s32.totalorder %s630_s1, %s433_s21  ;;  %p437_p1 = scmp.lt.u32.totalorder %s433_s21, %s630_s1 }
   0x7   :  { %p439_p2 = pnand %p437_p1, %p434_p0 }
   0x9   :  { %442 = shalt.err (!%p439_p2)
}
   0xa   :  { %s443_s26 = scalar_lea.vmem %s30_s16, 1024  ;;  %p448_p4 = scmp.lt.s32.totalorder %s30_s16, %s30_s16 }
   0xb   :  { %p444_p3 = scmp.ne.s32.totalorder %s30_s16, %s443_s26  ;;  %p449_p5 = scmp.lt.s32.totalorder %s443_s26, %s443_s26 }
   0xd   :  { %p450_p6 = por %p449_p5, %p448_p4 }
   0xf   :  { %p451_p7 = pnand %p450_p6, %p444_p3 }
  0x11   :  { %454 = shalt.err (!%p451_p7)
}
  0x12   :  { %s529_s27 = smov 64   ;;  %s530_s28 = smov 4  }
  0x13   :  { %35 = dma.hbm_to_vmem [thread:$0]  %s630_s1, 1024, %s30_s16, [#allocation7], %s529_s27, %s529_s27, %s530_s28  }
  0x14   :  { %s455_s7 = scalar_lea.hbm %s629_s0, 128 }
  0x15   :  { %p456_p8 = scmp.ne.s32.totalorder %s629_s0, %s455_s7  ;;  %p459_p9 = scmp.lt.u32.totalorder %s455_s7, %s629_s0 }
  0x17   :  { %p461_p10 = pnand %p459_p9, %p456_p8 }
  0x19   :  { %464 = shalt.err (!%p461_p10)
}
  0x1a   :  { %s465_s12 = scalar_lea.vmem %s562_s18, 128  ;;  %p470_p12 = scmp.lt.s32.totalorder %s562_s18, %s562_s18 }
  0x1b   :  { %p466_p11 = scmp.ne.s32.totalorder %s562_s18, %s465_s12  ;;  %p471_p13 = scmp.lt.s32.totalorder %s465_s12, %s465_s12 }
  0x1d   :  { %p472_p0 = por %p471_p13, %p470_p12 }
  0x1f   :  { %p473_p1 = pnand %p472_p0, %p466_p11 }
  0x21   :  { %476 = shalt.err (!%p473_p1)
}
  0x22   :  { %23 = dma.hbm_to_vmem [thread:$0]  %s629_s0, 128, %s562_s18, [#allocation4], %s529_s27, %s529_s27, %s530_s28  }
  0x23   :  { %s531_s14 = smov [#allocation8]   ;;  %s477_s19 = scalar_lea.hbm %s631_s2, 1024 }
  0x24   :  { %s41_s15 = sshll.u32 %s531_s14, 4  ;;  %p478_p2 = scmp.ne.s32.totalorder %s631_s2, %s477_s19  ;;  %s42_s15 = int_to_ptr.vmem [resolvable:$true] %s41_s15 }
  0x25   :  { %p481_p3 = scmp.lt.u32.totalorder %s477_s19, %s631_s2 }
  0x27   :  { %p483_p4 = pnand %p481_p3, %p478_p2 }
  0x29   :  { %486 = shalt.err (!%p483_p4)
}
  0x2a   :  { %s487_s24 = scalar_lea.vmem %s42_s15, 1024  ;;  %p492_p6 = scmp.lt.s32.totalorder %s42_s15, %s42_s15 }
  0x2b   :  { %p488_p5 = scmp.ne.s32.totalorder %s42_s15, %s487_s24  ;;  %p493_p7 = scmp.lt.s32.totalorder %s487_s24, %s487_s24 }
  0x2d   :  { %p494_p8 = por %p493_p7, %p492_p6 }
  0x2f   :  { %p495_p9 = pnand %p494_p8, %p488_p5 }
  0x31   :  { %498 = shalt.err (!%p495_p9)
}
  0x32   :  { %47 = dma.hbm_to_vmem [thread:$0]  %s631_s2, 1024, %s42_s15, [#allocation7], %s529_s27, %s529_s27, %s530_s28  }
  0x33   :  { %521 = dma.done.wait [#allocation4], 128  }
  0x34   :  { %522 = vsyncadd [#allocation4], 4294967168 }
  0x35   :  { %523 = dma.done.wait [#allocation7], 2048  }
  0x36   :  { %524 = vsyncadd [#allocation7], 4294965248  ;;  %v532_v0 = vmov 0.0   ;;  %vm533_vm0 = vmmov 0   ;;  %v416_v1 = vld [vmem:[#allocation6] sm:$0xff]   ;;  %v417_v2 = vld [vmem:[#allocation6 + $0x8] sm:$0xff]  }
  0x37   :  { %366 = vmatprep.subr.bf16.mxu0 %v532_v0  ;;  %382 = vmatprep.mubr.msk.bf16.mxu0 %vm533_vm0, %v532_v0  ;;  %v418_v3 = vld [vmem:[#allocation6 + $0x10] sm:$0xff]   ;;  %v425_v4 = vld [vmem:[#allocation8] sm:$0xff]   ;;  %v419_v5 = vld [vmem:[#allocation6 + $0x18] sm:$0xff]   ;;  %s534_s26 = smov [#allocation9]  }
  0x38   :  { %386 = vmatprep.subr.bf16.mxu1 %v532_v0  ;;  %402 = vmatprep.mubr.msk.bf16.mxu1 %vm533_vm0, %v532_v0  ;;  %v426_v6 = vld [vmem:[#allocation8 + $0x8] sm:$0xff]   ;;  %v420_v7 = vld [vmem:[#allocation6 + $0x20] sm:$0xff]   ;;  %v427_v8 = vld [vmem:[#allocation8 + $0x10] sm:$0xff]   ;;  %s315_s27 = sshll.u32 %s534_s26, 4  ;;  %s316_s27 = int_to_ptr.vmem [resolvable:$true] %s315_s27 }
  0x39   :  { %367 = vmatpush3.bf16.msra.mxu0 %v416_v1  ;;  %387 = vmatpush3.bf16.msra.mxu1 %v425_v4  ;;  %v421_v9 = vld [vmem:[#allocation6 + $0x28] sm:$0xff]   ;;  %v428_v10 = vld [vmem:[#allocation8 + $0x18] sm:$0xff]   ;;  %v422_v11 = vld [vmem:[#allocation6 + $0x30] sm:$0xff]   ;;  %s499_s28 = scalar_lea.vmem %s316_s27, 256  ;;  %p504_p11 = scmp.lt.s32.totalorder %s316_s27, %s316_s27 }
  0x3a   :  { %368 = vmatprep.subr.bf16.mxu0 %v532_v0  ;;  %388 = vmatprep.subr.bf16.mxu1 %v532_v0  ;;  %v429_v12 = vld [vmem:[#allocation8 + $0x20] sm:$0xff]   ;;  %v423_v13 = vld [vmem:[#allocation6 + $0x38] sm:$0xff]   ;;  %v430_v14 = vld [vmem:[#allocation8 + $0x28] sm:$0xff]   ;;  %p500_p10 = scmp.ne.s32.totalorder %s316_s27, %s499_s28  ;;  %p505_p12 = scmp.lt.s32.totalorder %s499_s28, %s499_s28 }
  0x3b   :  { %v424_v15 = vld [vmem:[#allocation3] sm:$0xff]   ;;  %v431_v16 = vld [vmem:[#allocation8 + $0x30] sm:$0xff]  }
  0x3c   :  { %v432_v17 = vld [vmem:[#allocation8 + $0x38] sm:$0xff]   ;;  %p506_p13 = por %p505_p12, %p504_p11 }
  0x3d   :  { %369 = vmatpush3.bf16.msra.mxu0 %v417_v2  ;;  %389 = vmatpush3.bf16.msra.mxu1 %v426_v6  ;;  %v339_v23 = vld [vmem:[%s632_s3] ss:$0 sm:$0xff] }
  0x3e   :  { %370 = vmatprep.subr.bf16.mxu0 %v532_v0  ;;  %390 = vmatprep.subr.bf16.mxu1 %v532_v0  ;;  %p507_p0 = pnand %p506_p13, %p500_p10 }
  0x41   :  { %371 = vmatpush3.bf16.msra.mxu0 %v418_v3  ;;  %391 = vmatpush3.bf16.msra.mxu1 %v427_v8 }
  0x42   :  { %372 = vmatprep.subr.bf16.mxu0 %v532_v0  ;;  %392 = vmatprep.subr.bf16.mxu1 %v532_v0 }
  0x45   :  { %373 = vmatpush3.bf16.msra.mxu0 %v419_v5  ;;  %393 = vmatpush3.bf16.msra.mxu1 %v428_v10 }
  0x46   :  { %374 = vmatprep.subr.bf16.mxu0 %v532_v0  ;;  %394 = vmatprep.subr.bf16.mxu1 %v532_v0 }
  0x49   :  { %375 = vmatpush3.bf16.msra.mxu0 %v420_v7  ;;  %395 = vmatpush3.bf16.msra.mxu1 %v429_v12 }
  0x4a   :  { %376 = vmatprep.subr.bf16.mxu0 %v532_v0  ;;  %396 = vmatprep.subr.bf16.mxu1 %v532_v0 }
  0x4d   :  { %377 = vmatpush3.bf16.msra.mxu0 %v421_v9  ;;  %397 = vmatpush3.bf16.msra.mxu1 %v430_v14 }
  0x4e   :  { %378 = vmatprep.subr.bf16.mxu0 %v532_v0  ;;  %398 = vmatprep.subr.bf16.mxu1 %v532_v0 }
  0x51   :  { %379 = vmatpush3.bf16.msra.mxu0 %v422_v11  ;;  %399 = vmatpush3.bf16.msra.mxu1 %v431_v16 }
  0x52   :  { %380 = vmatprep.subr.bf16.mxu0 %v532_v0  ;;  %400 = vmatprep.subr.bf16.mxu1 %v532_v0 }
  0x55   :  { %381 = vmatpush3.bf16.msra.mxu0 %v423_v13  ;;  %401 = vmatpush3.bf16.msra.mxu1 %v432_v17 }
  0x58   :  { %383 = vmatmul.mubr.bf16.vlgmr.msra.gmra.mrb[0].mxu0 %v424_v15 }
 0x12b   :  { %v179_v18 = vpop.f32.mrb[0].mxu0 }
 0x12c   :  { %v384_v19 = vpop.f32.mrb[1].mxu0 }
 0x12d   :  { %v182_v20 = vpop.f32.mrb[2].mxu0 }
 0x12e   :  { %v195_v21 = vpack.c.bf16 %v182_v20, %v179_v18  ;;  %v385_v22 = vpop.f32.mrb[3].mxu0 }
 0x130   :  { %403 = vmatmul.mubr.bf16.vlgmr.msra.gmra.mrb[0].mxu1 %v195_v21 }
 0x203   :  { %v301_v24 = vpop.f32.mrb[0].mxu1 }
 0x204   :  { %v302_v25 = vadd.f32 %v339_v23, %v301_v24  ;;  %v404_v26 = vpop.f32.mrb[1].mxu1 }
 0x205   :  { %v304_v27 = vpop.f32.mrb[2].mxu1 }
 0x206   :  { %308 = vst [vmem:[#allocation9] sm:$0xff] %v302_v25  ;;  %v305_v28 = vadd.f32 %v339_v23, %v304_v27  ;;  %v405_v29 = vpop.f32.mrb[3].mxu1 }
 0x208   :  { %309 = vst [vmem:[#allocation9 + $0x8] sm:$0xff] %v305_v28 }
 0x209   :  { %510 = shalt.err (!%p507_p0)
}
 0x20a   :  { %s511_s30 = scalar_lea.hbm %s633_s4, 256 }
 0x20b   :  { %p512_p1 = scmp.ne.s32.totalorder %s633_s4, %s511_s30  ;;  %p515_p2 = scmp.lt.u32.totalorder %s511_s30, %s633_s4 }
 0x20d   :  { %p517_p3 = pnand %p515_p2, %p512_p1 }
 0x20f   :  { %520 = shalt.err (!%p517_p3)
}
 0x210   :  { %s535_s9 = smov 128   ;;  %s536_s10 = smov 8  }
 0x211   :  { %321 = dma.vmem_to_hbm [thread:$0]  %s316_s27, 256, %s633_s4, [#allocation5], %s535_s9, %s535_s9, %s536_s10  }
 0x212   :  { %525 = dma.done.wait [#allocation5], 256  }
 0x213   :  { %526 = vsyncadd [#allocation5], 4294967040 }
 0x214   :  { %325 = vsyncpa [#allocation4], 1 }
 0x215   :  { %326 = vsyncpa [#allocation7], 1 }
 0x216   :  { %327 = vsyncpa [#allocation5], 1 }

</bundles_post_ra>
